<compile_context>
chip_gen: v5e
topology: v5e:2x2
jax: 0.10.0
libtpu: 0.0.40
codegen_flags: <defaults>
</compile_context>

<pallas_src>
import jax
import jax.numpy as jnp
from jax.experimental import pallas as pl
from jax.experimental.pallas import tpu as pltpu


def _round_up(x, m):
    return ((x + m - 1) // m) * m


def mlp_kernel(x_ref, w1_ref, b1_ref, w2_ref, b2_ref, w3_ref, b3_ref, o_ref):
    # x: (tile_n, in_f) bf16, streamed.  Weights bf16 / biases f32, resident.
    # Layer 1: lhid1  (bf16 x bf16 -> f32 accumulate on the MXU)
    h = jnp.dot(x_ref[...], w1_ref[...], preferred_element_type=jnp.float32)
    h = h + b1_ref[...]
    # Layer 2: lhid2
    h = jnp.dot(h.astype(jnp.bfloat16), w2_ref[...], preferred_element_type=jnp.float32)
    h = h + b2_ref[...]
    # Layer 3: lout
    y = jnp.dot(h.astype(jnp.bfloat16), w3_ref[...], preferred_element_type=jnp.float32)
    y = y + b3_ref[...]
    # sigmoid(y) = 0.5 * tanh(0.5 * y) + 0.5  -> one EUP op, overflow-safe.
    o_ref[...] = 0.5 * jnp.tanh(0.5 * y) + 0.5


def prepare_params(params):
    """One-time preparation, hoisted out of the per-call path.

    Casts weights to bf16 (3x MXU rate, half the resident VMEM) and keeps
    biases in f32 with shape (1, fan_out) so they broadcast-add cleanly.
    """
    w1, b1, w2, b2, w3, b3 = params
    bf, f32 = jnp.bfloat16, jnp.float32
    return (
        w1.astype(bf), jnp.reshape(b1, (1, -1)).astype(f32),
        w2.astype(bf), jnp.reshape(b2, (1, -1)).astype(f32),
        w3.astype(bf), jnp.reshape(b3, (1, -1)).astype(f32),
    )


def network_forward(state, prepared, *, tile_n_max=1024, target_steps=8):
    """state: (N, batch_size*input_size). Returns sigmoid(MLP(state)): (N, output_size)."""
    w1, b1, w2, b2, w3, b3 = prepared
    n, in_f = state.shape
    out = w3.shape[1]

    # Row tile: multiple of 16 (bf16 sublane packing). Aim for >= target_steps
    # grid steps (feeds both v7x TensorCores and the per-core double buffer),
    # capped at tile_n_max.  VMEM stays tiny either way (<< scoped limits).
    tile_n = min(tile_n_max, max(16, _round_up(pl.cdiv(n, target_steps), 16)))
    n_p = _round_up(n, tile_n)

    # Only HBM bytes the kernel touches: (n_p, in_f) bf16 in, (n_p, out) f32 out.
    x = state.astype(jnp.bfloat16)
    if n_p != n:
        x = jnp.zeros((n_p, in_f), jnp.bfloat16).at[:n].set(x)

    grid = (n_p // tile_n,)

    def resident(shape):
        # Same block for every grid step -> stays VMEM-resident across the grid.
        return pl.BlockSpec(shape, lambda i: (0, 0))

    out_arr = pl.pallas_call(
        mlp_kernel,
        out_shape=jax.ShapeDtypeStruct((n_p, out), jnp.float32),
        grid=grid,
        in_specs=[
            # Streamed rows at native feature width (last block dim == full dim).
            pl.BlockSpec((tile_n, in_f), lambda i: (i, 0)),
            resident(w1.shape), resident(b1.shape),
            resident(w2.shape), resident(b2.shape),
            resident(w3.shape), resident(b3.shape),
        ],
        # Native output width: tiny masked stores beat 32x padded writeback.
        out_specs=pl.BlockSpec((tile_n, out), lambda i: (i, 0)),
        compiler_params=pltpu.CompilerParams(
            dimension_semantics=("parallel",),  # v7x: both TCs split the row grid
        ),
    )(x, w1, b1, w2, b2, w3, b3)

    return out_arr[:n] if n_p != n else out_arr


def init_params(key, in_features, h1, h2, output_size):
    """Deterministic PyTorch-style uniform(-1/sqrt(fan_in), 1/sqrt(fan_in)) init."""
    ks = jax.random.split(key, 6)

    def lin(kw, kb, fan_in, fan_out):
        bound = 1.0 / jnp.sqrt(jnp.float32(fan_in))
        w = jax.random.uniform(kw, (fan_in, fan_out), jnp.float32, -bound, bound)
        b = jax.random.uniform(kb, (1, fan_out), jnp.float32, -bound, bound)
        return w, b

    w1, b1 = lin(ks[0], ks[1], in_features, h1)
    w2, b2 = lin(ks[2], ks[3], h1, h2)
    w3, b3 = lin(ks[4], ks[5], h2, output_size)
    return (w1, b1, w2, b2, w3, b3)


if __name__ == "__main__":
    # Module hyperparameters (small, consistent with the forward pass):
    input_size = 8
    batch_size = 2          # folded into the feature dim, per the module
    output_size = 4
    h1 = 32
    h2 = 32
    in_features = batch_size * input_size  # lhid1 expects batch_size*input_size features

    key = jax.random.PRNGKey(0)
    k_params, k_x = jax.random.split(key)
    params = init_params(k_params, in_features, h1, h2, output_size)
    prepared = prepare_params(params)   # hoisted: cast/reshape weights once

    # Enough rows that the grid has several steps (kernel regime).
    N = 256
    state = jax.random.normal(k_x, (N, in_features), jnp.float32)

    out = jax.block_until_ready(network_forward(state, prepared))
    assert out.shape == (N, output_size)

    # Reference mirroring the kernel's bf16-input / f32-accumulate math.
    w1, b1, w2, b2, w3, b3 = prepared
    f32 = jnp.float32
    xb = state.astype(jnp.bfloat16).astype(f32)
    h = xb @ w1.astype(f32) + b1
    h = h.astype(jnp.bfloat16).astype(f32) @ w2.astype(f32) + b2
    y = h.astype(jnp.bfloat16).astype(f32) @ w3.astype(f32) + b3
    ref = jax.nn.sigmoid(y)
    assert jnp.allclose(out, ref, atol=2e-3), "mismatch vs bf16 reference"

    # Loose sanity check against the exact f32 module semantics
    # (slack only covers bf16 quantization of weights/activations).
    w1f, b1f, w2f, b2f, w3f, b3f = params
    ref_f32 = jax.nn.sigmoid(((state @ w1f + b1f) @ w2f + b2f) @ w3f + b3f)
    assert jnp.allclose(out, ref_f32, atol=2e-2), "mismatch vs f32 module reference"

    print("KERNEL_OK")
</pallas_src>

<mosaic_0001>
module attributes {stable_mosaic.version = 11 : i64} {
  func.func @mlp_kernel(%arg0: i32, %arg1: memref<32x16xbf16, #tpu.memory_space<vmem>>, %arg2: memref<16x32xbf16, #tpu.memory_space<vmem>>, %arg3: memref<1x32xf32, #tpu.memory_space<vmem>>, %arg4: memref<32x32xbf16, #tpu.memory_space<vmem>>, %arg5: memref<1x32xf32, #tpu.memory_space<vmem>>, %arg6: memref<32x4xbf16, #tpu.memory_space<vmem>>, %arg7: memref<1x4xf32, #tpu.memory_space<vmem>>, %arg8: memref<32x4xf32, #tpu.memory_space<vmem>>) attributes {dimension_semantics = [#tpu.dimension_semantics<parallel>], iteration_bounds = array<i64: 8>, scalar_prefetch = 0 : i64, scratch_operands = 0 : i64, tpu.core_type = #tpu.core_type<tc>, window_params = [{transform_indices = @transform_0, window_bounds = array<i64: 32, 16>}, {pipeline_mode = #tpu.pipeline_mode<synchronous>, transform_indices = @transform_1, window_bounds = array<i64: 16, 32>}, {pipeline_mode = #tpu.pipeline_mode<synchronous>, transform_indices = @transform_2, window_bounds = array<i64: 1, 32>}, {pipeline_mode = #tpu.pipeline_mode<synchronous>, transform_indices = @transform_3, window_bounds = array<i64: 32, 32>}, {pipeline_mode = #tpu.pipeline_mode<synchronous>, transform_indices = @transform_4, window_bounds = array<i64: 1, 32>}, {pipeline_mode = #tpu.pipeline_mode<synchronous>, transform_indices = @transform_5, window_bounds = array<i64: 32, 4>}, {pipeline_mode = #tpu.pipeline_mode<synchronous>, transform_indices = @transform_6, window_bounds = array<i64: 1, 4>}, {transform_indices = @transform_7, window_bounds = array<i64: 32, 4>}]} {
    %c0 = arith.constant 0 : index
    %c0_0 = arith.constant 0 : index
    %0 = vector.load %arg1[%c0, %c0_0] : memref<32x16xbf16, #tpu.memory_space<vmem>>, vector<32x16xbf16>
    %c0_1 = arith.constant 0 : index
    %c0_2 = arith.constant 0 : index
    %1 = vector.load %arg2[%c0_1, %c0_2] : memref<16x32xbf16, #tpu.memory_space<vmem>>, vector<16x32xbf16>
    %cst = arith.constant dense<0.000000e+00> : vector<32x32xf32>
    %2 = tpu.matmul %0, %1, %cst {dimension_numbers = #tpu.dot_dimension_numbers<[1], [0], [0], [1], [0, 0, 1, 1], [], []>} : vector<32x16xbf16>, vector<16x32xbf16>, vector<32x32xf32> -> vector<32x32xf32>
    %c0_3 = arith.constant 0 : index
    %c0_4 = arith.constant 0 : index
    %3 = vector.load %arg3[%c0_3, %c0_4] : memref<1x32xf32, #tpu.memory_space<vmem>>, vector<1x32xf32>
    %4 = vector.broadcast %3 : vector<1x32xf32> to vector<32x32xf32>
    %5 = arith.addf %2, %4 : vector<32x32xf32>
    %6 = arith.truncf %5 : vector<32x32xf32> to vector<32x32xbf16>
    %c0_5 = arith.constant 0 : index
    %c0_6 = arith.constant 0 : index
    %7 = vector.load %arg4[%c0_5, %c0_6] : memref<32x32xbf16, #tpu.memory_space<vmem>>, vector<32x32xbf16>
    %cst_7 = arith.constant dense<0.000000e+00> : vector<32x32xf32>
    %8 = tpu.matmul %6, %7, %cst_7 {dimension_numbers = #tpu.dot_dimension_numbers<[1], [0], [0], [1], [0, 0, 1, 1], [], []>} : vector<32x32xbf16>, vector<32x32xbf16>, vector<32x32xf32> -> vector<32x32xf32>
    %c0_8 = arith.constant 0 : index
    %c0_9 = arith.constant 0 : index
    %9 = vector.load %arg5[%c0_8, %c0_9] : memref<1x32xf32, #tpu.memory_space<vmem>>, vector<1x32xf32>
    %10 = vector.broadcast %9 : vector<1x32xf32> to vector<32x32xf32>
    %11 = arith.addf %8, %10 : vector<32x32xf32>
    %12 = arith.truncf %11 : vector<32x32xf32> to vector<32x32xbf16>
    %c0_10 = arith.constant 0 : index
    %c0_11 = arith.constant 0 : index
    %13 = vector.load %arg6[%c0_10, %c0_11] : memref<32x4xbf16, #tpu.memory_space<vmem>>, vector<32x4xbf16>
    %cst_12 = arith.constant dense<0.000000e+00> : vector<32x4xf32>
    %14 = tpu.matmul %12, %13, %cst_12 {dimension_numbers = #tpu.dot_dimension_numbers<[1], [0], [0], [1], [0, 0, 1, 1], [], []>} : vector<32x32xbf16>, vector<32x4xbf16>, vector<32x4xf32> -> vector<32x4xf32>
    %c0_13 = arith.constant 0 : index
    %c0_14 = arith.constant 0 : index
    %15 = vector.load %arg7[%c0_13, %c0_14] : memref<1x4xf32, #tpu.memory_space<vmem>>, vector<1x4xf32>
    %16 = vector.broadcast %15 : vector<1x4xf32> to vector<32x4xf32>
    %17 = arith.addf %14, %16 : vector<32x4xf32>
    %cst_15 = arith.constant 5.000000e-01 : f32
    %18 = vector.broadcast %cst_15 : f32 to vector<32x4xf32>
    %19 = arith.mulf %18, %17 : vector<32x4xf32>
    %20 = math.tanh %19 : vector<32x4xf32>
    %cst_16 = arith.constant 5.000000e-01 : f32
    %21 = vector.broadcast %cst_16 : f32 to vector<32x4xf32>
    %22 = arith.mulf %21, %20 : vector<32x4xf32>
    %cst_17 = arith.constant 5.000000e-01 : f32
    %23 = vector.broadcast %cst_17 : f32 to vector<32x4xf32>
    %24 = arith.addf %22, %23 : vector<32x4xf32>
    %c0_18 = arith.constant 0 : index
    %c0_19 = arith.constant 0 : index
    %25 = vector.load %arg8[%c0_18, %c0_19] : memref<32x4xf32, #tpu.memory_space<vmem>>, vector<32x4xf32>
    tpu.vector_store %arg8[%c0_18, %c0_19], %24 {strides = array<i32>} : memref<32x4xf32, #tpu.memory_space<vmem>>, vector<32x4xf32>,
    return
  }
  func.func @transform_0(%arg0: i32) -> (i32, i32) {
    %c0_i32 = arith.constant 0 : i32
    %c0_i32_0 = arith.constant 0 : i32
    return %arg0, %c0_i32 : i32, i32
  }
  func.func @transform_1(%arg0: i32) -> (i32, i32) {
    %c0_i32 = arith.constant 0 : i32
    %c0_i32_0 = arith.constant 0 : i32
    %c0_i32_1 = arith.constant 0 : i32
    return %c0_i32, %c0_i32_0 : i32, i32
  }
  func.func @transform_2(%arg0: i32) -> (i32, i32) {
    %c0_i32 = arith.constant 0 : i32
    %c0_i32_0 = arith.constant 0 : i32
    %c0_i32_1 = arith.constant 0 : i32
    return %c0_i32, %c0_i32_0 : i32, i32
  }
  func.func @transform_3(%arg0: i32) -> (i32, i32) {
    %c0_i32 = arith.constant 0 : i32
    %c0_i32_0 = arith.constant 0 : i32
    %c0_i32_1 = arith.constant 0 : i32
    return %c0_i32, %c0_i32_0 : i32, i32
  }
  func.func @transform_4(%arg0: i32) -> (i32, i32) {
    %c0_i32 = arith.constant 0 : i32
    %c0_i32_0 = arith.constant 0 : i32
    %c0_i32_1 = arith.constant 0 : i32
    return %c0_i32, %c0_i32_0 : i32, i32
  }
  func.func @transform_5(%arg0: i32) -> (i32, i32) {
    %c0_i32 = arith.constant 0 : i32
    %c0_i32_0 = arith.constant 0 : i32
    %c0_i32_1 = arith.constant 0 : i32
    return %c0_i32, %c0_i32_0 : i32, i32
  }
  func.func @transform_6(%arg0: i32) -> (i32, i32) {
    %c0_i32 = arith.constant 0 : i32
    %c0_i32_0 = arith.constant 0 : i32
    %c0_i32_1 = arith.constant 0 : i32
    return %c0_i32, %c0_i32_0 : i32, i32
  }
  func.func @transform_7(%arg0: i32) -> (i32, i32) {
    %c0_i32 = arith.constant 0 : i32
    %c0_i32_0 = arith.constant 0 : i32
    return %arg0, %c0_i32 : i32, i32
  }
}

</mosaic_0001>

<bundles_post_ra>
// kernel: tpu_custom_call.1
= control target key start
LH: loop header
LB: loop body
LE: loop exit
PB: predicated region body
PF: predicated region fallthrough
CT: control target
= control target key end

     0   :  { %s628_s24 = smov 0   ;;  %s681_s0 = inlined_call_operand.vmem [shape: bf16[256,16], index: 0, kind: input, shape index: {}]   ;;  %s682_s1 = inlined_call_operand.vmem [shape: bf16[16,32], index: 1, kind: input, shape index: {}]   ;;  %s683_s2 = inlined_call_operand.vmem [shape: f32[1,32], index: 2, kind: input, shape index: {}]   ;;  %s684_s3 = inlined_call_operand.vmem [shape: bf16[32,32], index: 3, kind: input, shape index: {}]   ;;  %s685_s4 = inlined_call_operand.vmem [shape: f32[1,32], index: 4, kind: input, shape index: {}]   ;;  %s686_s5 = inlined_call_operand.vmem [shape: bf16[32,4], index: 5, kind: input, shape index: {}]   ;;  %s687_s6 = inlined_call_operand.vmem [shape: f32[1,4], index: 6, kind: input, shape index: {}]   ;;  %s688_s7 = inlined_call_operand.vmem [shape: f32[256,4], index: 7, kind: output, shape index: {}]  }
   0x1 LB: > { %s507_s25 = sadd.s32 4294967295, %s586_s24   ;;  %p511_p0 = scmp.ge.s32.totalorder %s586_s24, 1  ;;  %s586_s24 = sphi %s628_s24, %s17_s24  }
   0x2   : > { %p238_p1 = scmp.lt.s32.totalorder %s586_s24, 9 }
   0x4   : > { %p239_p2 = pnand %p511_p0, %p238_p1 }
   0x5   : > { %s512_s28 = sshll.u32 (!%p239_p2), %s507_s25, 2 }
   0x6   : > { %242 = sbr.rel (%p239_p2) target bundleno = 469 (0x1d5), region = 48  ;;  %p271_p3 = scmp.lt.s32.totalorder (!%p239_p2), %s512_s28, 31 }
   0xb   : > { %v554_v0 = vld [vmem:[%s682_s1] sm:$0xff]  ;;  %s690_s28 = smov (!%p271_p3, %s512_s28), 31  ;;  %vm309_vm0 = vcmask 130048   ;;  %v556_v3 = vld [vmem:[%s684_s3 + $0x8] sm:$0xff]  ;;  %vm357_vm1 = vcmask 261120   ;;  %vm446_vm2 = vcmask 31744  }
   0xc   : > { %323 = vmatpush.bf16.msra.mxu0 %v554_v0  ;;  %s513_s29 = sshll.u32 %s690_s28, 2  ;;  %370 = vmatpush.bf16.msra.mxu1 %v556_v3  ;;  %v555_v4 = vld [vmem:[%s684_s3] sm:$0xff]  ;;  %v558_v16 = vld [vmem:[%s686_s5 + $0x8] sm:$0xff]  ;;  %s515_s25 = sshll.u32 %s690_s28, 3 }
   0xd   : > { %s274_s9 = scalar_lea.vmem %s681_s0, %s513_s29  ;;  %559 = vmatpush.bf16.msra.mxu3 %v556_v3  ;;  %v569_v6 = vld [vmem:[%s683_s2] ss:$0 sm:$0xff]  ;;  %417 = vmatpush.bf16.msra.mxu2 %v558_v16  ;;  %s280_s29 = scalar_lea.vmem %s688_s7, %s515_s25 }
   0xe   : > { %v552_v1 = vld [vmem:[%s274_s9] sm:$0xff]  ;;  %v553_v2 = vld [vmem:[%s274_s9 + $0x8] sm:$0xff] }
   0xf   : > { %528 = vmatmul.msk.bf16.vlgmr.msra.gmra.mxu0 %vm309_vm0, %v552_v1  ;;  %v557_v17 = vld [vmem:[%s686_s5] sm:$0xff] }
  0x10   : > { %371 = vmatpush.bf16.msra.mxu1 %v555_v4  ;;  %v570_v19 = vld [vmem:[%s685_s4] ss:$0 sm:$0xff] }
  0x11   : > { %560 = vmatpush.bf16.msra.mxu3 %v555_v4  ;;  %418 = vmatpush.bf16.msra.mxu2 %v557_v17  ;;  %v571_v29 = vld [vmem:[%s687_s6] ss:$0 sm:$0xff] }
  0x1f   : > { %529 = vmatmul.msk.bf16.gmra.mxu0 %vm309_vm0, %v553_v2 }
  0x8c   : > { %v325_v5 = vpop.f32.mrf.mxu0 }
  0x8d   : > { %v326_v8 = vadd.f32 %v569_v6, %v325_v5 }
  0x94   : > { %v327_v7 = vpop.f32.mrf.mxu0 }
  0x95   : > { %v328_v9 = vadd.f32 %v569_v6, %v327_v7 }
  0x97   : > { %v335_v10 = vpack.c.bf16 %v328_v9, %v326_v8 }
  0x99   : > { %538 = vmatmul.msk.bf16.vlgmr.msra.gmra.mxu1 %vm357_vm1, %v335_v10 }
  0x9c   : > { %v330_v11 = vpop.f32.mrf.mxu0 }
  0x9d   : > { %v331_v13 = vadd.f32 %v569_v6, %v330_v11 }
  0xa4   : > { %v332_v12 = vpop.f32.mrf.mxu0 }
  0xa5   : > { %v333_v14 = vadd.f32 %v569_v6, %v332_v12 }
  0xa7   : > { %v336_v15 = vpack.c.bf16 %v333_v14, %v331_v13 }
  0xa9   : > { %539 = vmatmul.msk.bf16.vlgmr.msra.gmra.mxu3 %vm357_vm1, %v336_v15 }
 0x116   : > { %v373_v18 = vpop.f32.mrf.mxu1 }
 0x117   : > { %v374_v21 = vadd.f32 %v570_v19, %v373_v18 }
 0x11e   : > { %v375_v20 = vpop.f32.mrf.mxu1 }
 0x11f   : > { %v376_v22 = vadd.f32 %v570_v19, %v375_v20 }
 0x121   : > { %v383_v23 = vpack.c.bf16 %v376_v22, %v374_v21 }
 0x123   : > { %548 = vmatmul.msk.bf16.vlgmr.msra.gmra.mxu2 %vm357_vm1, %v383_v23 }
 0x12c   : > { %v378_v24 = vpop.f32.mrf.mxu3 }
 0x12d   : > { %v379_v26 = vadd.f32 %v570_v19, %v378_v24 }
 0x134   : > { %v380_v25 = vpop.f32.mrf.mxu3 }
 0x135   : > { %v381_v27 = vadd.f32 %v570_v19, %v380_v25 }
 0x137   : > { %v384_v28 = vpack.c.bf16 %v381_v27, %v379_v26 }
 0x139   : > { %549 = vmatmul.msk.bf16.gmra.mxu2 %vm357_vm1, %v384_v28 }
 0x1a6   : > { %v420_v30 = vpop.f32.mrf.mxu2 }
 0x1a7   : > { %v421_v31 = vadd.f32 %v571_v29, %v420_v30 }
 0x1a9   : > { %v430_v32 = vmul.f32 0.5, %v421_v31 }
 0x1ab   : > { %572 = vtanh.f32 %v430_v32 }
 0x1ae   : > { %v422_v33 = vpop.f32.mrf.mxu2 }
 0x1af   : > { %v423_v34 = vadd.f32 %v571_v29, %v422_v33 }
 0x1b1   : > { %v573_v35 = vpop.eup %572  ;;  %v431_v36 = vmul.f32 0.5, %v423_v34 }
 0x1b2   : > { %v438_v37 = vmul.f32 0.5, %v573_v35 }
 0x1b3   : > { %574 = vtanh.f32 %v431_v36 }
 0x1b4   : > { %v442_v38 = vadd.f32 0.5, %v438_v37 }
 0x1b6   : > { %447 = vst.msk [vmem:[%s280_s29] sm:$0xff] %vm446_vm2, %v442_v38 }
 0x1b9   : > { %v575_v39 = vpop.eup %574 }
 0x1ba   : > { %v439_v40 = vmul.f32 0.5, %v575_v39 }
 0x1bc   : > { %v443_v41 = vadd.f32 0.5, %v439_v40  ;;  %v425_v42 = vpop.f32.mrf.mxu2 }
 0x1bd   : > { %v426_v43 = vadd.f32 %v571_v29, %v425_v42 }
 0x1be   : > { %448 = vst.msk [vmem:[%s280_s29 + $0x8] sm:$0xff] %vm446_vm2, %v443_v41 }
 0x1bf   : > { %v432_v44 = vmul.f32 0.5, %v426_v43 }
 0x1c1   : > { %576 = vtanh.f32 %v432_v44 }
 0x1c4   : > { %v427_v45 = vpop.f32.mrf.mxu2 }
 0x1c5   : > { %v428_v46 = vadd.f32 %v571_v29, %v427_v45 }
 0x1c7   : > { %v577_v47 = vpop.eup %576  ;;  %v433_v48 = vmul.f32 0.5, %v428_v46 }
 0x1c8   : > { %v440_v49 = vmul.f32 0.5, %v577_v47 }
 0x1c9   : > { %578 = vtanh.f32 %v433_v48 }
 0x1ca   : > { %v444_v50 = vadd.f32 0.5, %v440_v49 }
 0x1cc   : > { %449 = vst.msk [vmem:[%s280_s29 + $0x10] sm:$0xff] %vm446_vm2, %v444_v50 }
 0x1cf   : > { %v579_v51 = vpop.eup %578 }
 0x1d0   : > { %v441_v52 = vmul.f32 0.5, %v579_v51 }
 0x1d2   : > { %v445_v53 = vadd.f32 0.5, %v441_v52 }
 0x1d4   : > { %450 = vst.msk [vmem:[%s280_s29 + $0x18] sm:$0xff] %vm446_vm2, %v445_v53 }
 0x1d5 PF: > { %s17_s24 = sadd.s32 1, %s586_s24  }
 0x1d6   : > { %p14_p4 = scmp.ge.s32.totalorder %s17_s24, 10  }
 0x1d8   :  { %16 = sbr.rel (!%p14_p4) target bundleno = 1 (0x1), region = 78 }

</bundles_post_ra>
